<compile_context>
chip_gen: v5e
topology: v5e:2x2
jax: 0.10.0
libtpu: 0.0.40
codegen_flags: <defaults>
</compile_context>

<pallas_src>
import functools

import jax
import jax.numpy as jnp
from jax.experimental import pallas as pl
from jax.experimental.pallas import tpu as pltpu

_MIB = 1024 * 1024
_LANE = 128
_SUBLANE = 8


def _round_up(v, m):
    return ((v + m - 1) // m) * m


def adapter_kernel(x_ref, wd_ref, bd_ref, wu_ref, bu_ref, o_ref):
    # x_ref : (TM, Dp)    wd_ref: (Dp, Bp)   bd_ref: (1, Bp)  [f32]
    # wu_ref: (Bp, Dp)    bu_ref: (1, Dp)    [f32]            o_ref: (TM, Dp)
    x = x_ref[...]
    # down projection (f32 accumulation on the MXU) + bias + ReLU, all in f32
    h = jnp.dot(x, wd_ref[...], preferred_element_type=jnp.float32) + bd_ref[...]
    h = jnp.maximum(h, 0.0)
    # up projection (operands in streaming dtype, f32 accumulation) + bias
    up = jnp.dot(h.astype(wu_ref.dtype), wu_ref[...],
                 preferred_element_type=jnp.float32) + bu_ref[...]
    # residual add in f32, single cast on store
    o_ref[...] = (x.astype(jnp.float32) + up).astype(o_ref.dtype)


def _chip_config():
    """Returns (vmem_limit_bytes, tensorcores_per_chip); conservative on failure."""
    phys_vmem = 128 * _MIB
    cores = 1
    try:
        kind = jax.devices()[0].device_kind.lower()
        if "v7" in kind:
            phys_vmem, cores = 64 * _MIB, 2
        elif "v4" in kind:
            cores = 2
    except Exception:
        pass
    try:  # authoritative physical VMEM size, if the query is available
        phys_vmem = int(pltpu.get_tpu_info().vmem_capacity_bytes)
    except Exception:
        pass
    # Leave headroom for compiler scratch; never ask for more than ~100 MiB.
    limit = max(32 * _MIB, min(phys_vmem - 8 * _MIB, 100 * _MIB))
    return limit, cores


def _derive_tm(M, dim_p, bn_p, elt, vmem_limit, cores):
    """Largest row tile that fits the per-chip VMEM budget (multiple of 8)."""
    # Resident weights/biases are double-buffered by the default pipeline.
    w_bytes = 2 * dim_p * bn_p * elt + (bn_p + dim_p) * 4
    budget = int(0.75 * vmem_limit) - 2 * w_bytes
    # Per row: double-buffered x tile + out tile, plus the f32 h intermediate.
    per_row = 4 * dim_p * elt + bn_p * 4
    tm = max(_SUBLANE, budget // max(per_row, 1))
    tm = min(tm, 2048)  # diminishing returns past ~1-2K rows (~0.35us/step amortized)
    tm = max(_SUBLANE, (tm // _SUBLANE) * _SUBLANE)
    if tm >= M:
        tm = M
        if cores > 1 and M >= _SUBLANE * cores:
            # Keep >=1 tile per TensorCore so the "parallel" axis feeds both.
            tm = max(_SUBLANE, _round_up(pl.cdiv(M, cores), _SUBLANE))
    return tm


def adapter_forward(x, w_down, b_down, w_up, b_up, *, tm=None):
    """Adapter forward pass: x + up(relu(down(x))).

    x: (batch, seq, dim).  Streams activations/weights in x.dtype (pass bf16
    inputs for the bandwidth-bound fast path); accumulation is f32 inside the
    kernel.  Returns the same shape and dtype as x.
    """
    batch, seq, dim = x.shape
    bottleneck = w_down.shape[1]
    M = batch * seq
    dtype = x.dtype
    elt = jnp.dtype(dtype).itemsize

    # Lane-dense padding: dim / bottleneck rounded up to multiples of 128 so
    # stores are full vregs and the MXU sees full tiles.  Zero-padded weight
    # rows/cols and zero bias padding leave the math unchanged.
    dim_p = _round_up(dim, _LANE)
    bn_p = _round_up(bottleneck, _LANE)

    x2 = x.reshape(M, dim)
    if dim_p != dim:
        x2 = jnp.pad(x2, ((0, 0), (0, dim_p - dim)))

    wd = jnp.pad(w_down.astype(dtype),
                 ((0, dim_p - dim), (0, bn_p - bottleneck)))
    wu = jnp.pad(w_up.astype(dtype),
                 ((0, bn_p - bottleneck), (0, dim_p - dim)))
    bd = jnp.pad(b_down.astype(jnp.float32),
                 (0, bn_p - bottleneck)).reshape(1, bn_p)
    bu = jnp.pad(b_up.astype(jnp.float32),
                 (0, dim_p - dim)).reshape(1, dim_p)

    vmem_limit, cores = _chip_config()
    if tm is None:
        tm = _derive_tm(M, dim_p, bn_p, elt, vmem_limit, cores)
    else:
        tm = min(tm, M)
        if tm < M:
            tm = max(_SUBLANE, (tm // _SUBLANE) * _SUBLANE)
    grid_m = pl.cdiv(M, tm)

    out2 = pl.pallas_call(
        adapter_kernel,
        out_shape=jax.ShapeDtypeStruct((M, dim_p), dtype),
        grid_spec=pltpu.PrefetchScalarGridSpec(
            num_scalar_prefetch=0,
            grid=(grid_m,),
            in_specs=[
                # streamed activation tile
                pl.BlockSpec((tm, dim_p), lambda i: (i, 0)),
                # weights / biases: constant index_map -> stay VMEM-resident
                pl.BlockSpec((dim_p, bn_p), lambda i: (0, 0)),
                pl.BlockSpec((1, bn_p), lambda i: (0, 0)),
                pl.BlockSpec((bn_p, dim_p), lambda i: (0, 0)),
                pl.BlockSpec((1, dim_p), lambda i: (0, 0)),
            ],
            out_specs=pl.BlockSpec((tm, dim_p), lambda i: (i, 0)),
        ),
        compiler_params=pltpu.CompilerParams(
            dimension_semantics=("parallel",),
            vmem_limit_bytes=vmem_limit,
        ),
    )(x2, wd, bd, wu, bu)

    if dim_p != dim:
        out2 = out2[:, :dim]
    return out2.reshape(batch, seq, dim)


def reference_forward(x, w_down, b_down, w_up, b_up):
    h = jnp.maximum(x @ w_down + b_down, 0.0)
    return x + h @ w_up + b_up


if __name__ == "__main__":
    # Small, module-consistent shapes: batch=2, seq=8, dim=64, bottleneck=32.
    batch, seq, dim, bottleneck = 2, 8, 64, 32

    key = jax.random.PRNGKey(0)
    kx, kwd, kbd, kwu, kbu = jax.random.split(key, 5)

    x = jax.random.normal(kx, (batch, seq, dim), dtype=jnp.float32)
    # Deterministic parameter init (mimics nn.Linear's uniform fan-in init).
    w_down = jax.random.uniform(kwd, (dim, bottleneck), jnp.float32,
                                minval=-1.0, maxval=1.0) / jnp.sqrt(dim)
    b_down = jax.random.uniform(kbd, (bottleneck,), jnp.float32,
                                minval=-1.0, maxval=1.0) / jnp.sqrt(dim)
    w_up = jax.random.uniform(kwu, (bottleneck, dim), jnp.float32,
                              minval=-1.0, maxval=1.0) / jnp.sqrt(bottleneck)
    b_up = jax.random.uniform(kbu, (dim,), jnp.float32,
                              minval=-1.0, maxval=1.0) / jnp.sqrt(bottleneck)

    ref = reference_forward(x, w_down, b_down, w_up, b_up)

    # 1) f32 path, small forced tile (tm=8) so the grid has >1 step and the
    #    pipelined/tiled path is actually exercised.
    fwd_small = jax.jit(functools.partial(adapter_forward, tm=8))
    out = jax.block_until_ready(fwd_small(x, w_down, b_down, w_up, b_up))
    assert out.shape == x.shape and out.dtype == x.dtype
    assert jnp.allclose(out, ref, atol=1e-5, rtol=1e-5)

    # 2) auto-derived tile (per-chip VMEM-aware sizing path).
    fwd_auto = jax.jit(adapter_forward)
    out_auto = jax.block_until_ready(fwd_auto(x, w_down, b_down, w_up, b_up))
    assert jnp.allclose(out_auto, ref, atol=1e-5, rtol=1e-5)

    # 3) bf16 streaming path (recommended production mode: halves HBM traffic,
    #    f32 accumulation inside the kernel).
    out_bf16 = jax.block_until_ready(
        fwd_auto(x.astype(jnp.bfloat16), w_down, b_down, w_up, b_up))
    assert out_bf16.dtype == jnp.bfloat16
    assert jnp.allclose(out_bf16.astype(jnp.float32), ref, atol=1e-1, rtol=5e-2)

    print("KERNEL_OK")
</pallas_src>

<mosaic_0001>
module attributes {stable_mosaic.version = 11 : i64} {
  func.func @adapter_kernel(%arg0: i32, %arg1: memref<8x128xf32, #tpu.memory_space<vmem>>, %arg2: memref<128x128xf32, #tpu.memory_space<vmem>>, %arg3: memref<1x128xf32, #tpu.memory_space<vmem>>, %arg4: memref<128x128xf32, #tpu.memory_space<vmem>>, %arg5: memref<1x128xf32, #tpu.memory_space<vmem>>, %arg6: memref<8x128xf32, #tpu.memory_space<vmem>>) attributes {dimension_semantics = [#tpu.dimension_semantics<parallel>], iteration_bounds = array<i64: 2>, scalar_prefetch = 0 : i64, scratch_operands = 0 : i64, tpu.core_type = #tpu.core_type<tc>, window_params = [{transform_indices = @transform_0, window_bounds = array<i64: 8, 128>}, {pipeline_mode = #tpu.pipeline_mode<synchronous>, transform_indices = @transform_1, window_bounds = array<i64: 128, 128>}, {pipeline_mode = #tpu.pipeline_mode<synchronous>, transform_indices = @transform_2, window_bounds = array<i64: 1, 128>}, {pipeline_mode = #tpu.pipeline_mode<synchronous>, transform_indices = @transform_3, window_bounds = array<i64: 128, 128>}, {pipeline_mode = #tpu.pipeline_mode<synchronous>, transform_indices = @transform_4, window_bounds = array<i64: 1, 128>}, {transform_indices = @transform_5, window_bounds = array<i64: 8, 128>}]} {
    %c0 = arith.constant 0 : index
    %c0_0 = arith.constant 0 : index
    %0 = vector.load %arg1[%c0, %c0_0] : memref<8x128xf32, #tpu.memory_space<vmem>>, vector<8x128xf32>
    %c0_1 = arith.constant 0 : index
    %c0_2 = arith.constant 0 : index
    %1 = vector.load %arg2[%c0_1, %c0_2] : memref<128x128xf32, #tpu.memory_space<vmem>>, vector<128x128xf32>
    %cst = arith.constant dense<0.000000e+00> : vector<8x128xf32>
    %2 = tpu.matmul %0, %1, %cst {dimension_numbers = #tpu.dot_dimension_numbers<[1], [0], [0], [1], [0, 0, 1, 1], [], []>} : vector<8x128xf32>, vector<128x128xf32>, vector<8x128xf32> -> vector<8x128xf32>
    %c0_3 = arith.constant 0 : index
    %c0_4 = arith.constant 0 : index
    %3 = vector.load %arg3[%c0_3, %c0_4] : memref<1x128xf32, #tpu.memory_space<vmem>>, vector<1x128xf32>
    %4 = vector.broadcast %3 : vector<1x128xf32> to vector<8x128xf32>
    %5 = arith.addf %2, %4 : vector<8x128xf32>
    %cst_5 = arith.constant 0.000000e+00 : f32
    %6 = vector.broadcast %cst_5 : f32 to vector<8x128xf32>
    %7 = arith.maximumf %5, %6 : vector<8x128xf32>
    %c0_6 = arith.constant 0 : index
    %c0_7 = arith.constant 0 : index
    %8 = vector.load %arg4[%c0_6, %c0_7] : memref<128x128xf32, #tpu.memory_space<vmem>>, vector<128x128xf32>
    %cst_8 = arith.constant dense<0.000000e+00> : vector<8x128xf32>
    %9 = tpu.matmul %7, %8, %cst_8 {dimension_numbers = #tpu.dot_dimension_numbers<[1], [0], [0], [1], [0, 0, 1, 1], [], []>} : vector<8x128xf32>, vector<128x128xf32>, vector<8x128xf32> -> vector<8x128xf32>
    %c0_9 = arith.constant 0 : index
    %c0_10 = arith.constant 0 : index
    %10 = vector.load %arg5[%c0_9, %c0_10] : memref<1x128xf32, #tpu.memory_space<vmem>>, vector<1x128xf32>
    %11 = vector.broadcast %10 : vector<1x128xf32> to vector<8x128xf32>
    %12 = arith.addf %9, %11 : vector<8x128xf32>
    %13 = arith.addf %0, %12 : vector<8x128xf32>
    %c0_11 = arith.constant 0 : index
    %c0_12 = arith.constant 0 : index
    %14 = vector.load %arg6[%c0_11, %c0_12] : memref<8x128xf32, #tpu.memory_space<vmem>>, vector<8x128xf32>
    tpu.vector_store %arg6[%c0_11, %c0_12], %13 {strides = array<i32>} : memref<8x128xf32, #tpu.memory_space<vmem>>, vector<8x128xf32>,
    return
  }
  func.func @transform_0(%arg0: i32) -> (i32, i32) {
    %c0_i32 = arith.constant 0 : i32
    %c0_i32_0 = arith.constant 0 : i32
    return %arg0, %c0_i32 : i32, i32
  }
  func.func @transform_1(%arg0: i32) -> (i32, i32) {
    %c0_i32 = arith.constant 0 : i32
    %c0_i32_0 = arith.constant 0 : i32
    %c0_i32_1 = arith.constant 0 : i32
    return %c0_i32, %c0_i32_0 : i32, i32
  }
  func.func @transform_2(%arg0: i32) -> (i32, i32) {
    %c0_i32 = arith.constant 0 : i32
    %c0_i32_0 = arith.constant 0 : i32
    %c0_i32_1 = arith.constant 0 : i32
    return %c0_i32, %c0_i32_0 : i32, i32
  }
  func.func @transform_3(%arg0: i32) -> (i32, i32) {
    %c0_i32 = arith.constant 0 : i32
    %c0_i32_0 = arith.constant 0 : i32
    %c0_i32_1 = arith.constant 0 : i32
    return %c0_i32, %c0_i32_0 : i32, i32
  }
  func.func @transform_4(%arg0: i32) -> (i32, i32) {
    %c0_i32 = arith.constant 0 : i32
    %c0_i32_0 = arith.constant 0 : i32
    %c0_i32_1 = arith.constant 0 : i32
    return %c0_i32, %c0_i32_0 : i32, i32
  }
  func.func @transform_5(%arg0: i32) -> (i32, i32) {
    %c0_i32 = arith.constant 0 : i32
    %c0_i32_0 = arith.constant 0 : i32
    return %arg0, %c0_i32 : i32, i32
  }
}

</mosaic_0001>

<bundles_post_ra>
// kernel: adapter_forward.1
= control target key start
LH: loop header
LB: loop body
LE: loop exit
PB: predicated region body
PF: predicated region fallthrough
CT: control target
= control target key end

     0   :  { %s414_s18 = smov 0   ;;  %s544_s0 = inlined_call_operand.vmem [shape: f32[16,128], index: 0, kind: input, shape index: {}]   ;;  %s545_s1 = inlined_call_operand.vmem [shape: f32[128,128], index: 1, kind: input, shape index: {}]   ;;  %s546_s2 = inlined_call_operand.vmem [shape: f32[1,128], index: 2, kind: input, shape index: {}]   ;;  %s547_s3 = inlined_call_operand.vmem [shape: f32[128,128], index: 3, kind: input, shape index: {}]   ;;  %s548_s4 = inlined_call_operand.vmem [shape: f32[1,128], index: 4, kind: input, shape index: {}]   ;;  %s549_s5 = inlined_call_operand.vmem [shape: f32[16,128], index: 5, kind: output, shape index: {}]  }
   0x1 LB: > { %s357_s19 = sadd.s32 4294967295, %s382_s18   ;;  %p361_p0 = scmp.ge.s32.totalorder %s382_s18, 1  ;;  %s382_s18 = sphi %s414_s18, %s15_s18  }
   0x2   : > { %p186_p1 = scmp.lt.s32.totalorder %s382_s18, 3 }
   0x4   : > { %p187_p2 = pnand %p361_p0, %p186_p1 }
   0x5   : > { %p212_p3 = scmp.lt.s32.totalorder (!%p187_p2), %s357_s19, 1 }
   0x6   : > { %190 = sbr.rel (%p187_p2) target bundleno = 304 (0x130), region = 40 }
   0xb   : > { %v236_v0 = vld [vmem:[%s545_s1 + $0x78] sm:$0xff]  ;;  %v235_v1 = vld [vmem:[%s545_s1 + $0x70] sm:$0xff]  ;;  %v234_v2 = vld [vmem:[%s545_s1 + $0x68] sm:$0xff]  ;;  %s551_s19 = smov (!%p212_p3, %s357_s19), 1 }
   0xc   : > { %241 = vmatpush.msra.mxu0 %v236_v0  ;;  %v233_v3 = vld [vmem:[%s545_s1 + $0x60] sm:$0xff]  ;;  %v277_v4 = vld [vmem:[%s547_s3 + $0x78] sm:$0xff]  ;;  %v276_v5 = vld [vmem:[%s547_s3 + $0x70] sm:$0xff]  ;;  %s362_s20 = sshll.u32 %s551_s19, 3 }
   0xd   : > { %v232_v6 = vld [vmem:[%s545_s1 + $0x58] sm:$0xff]  ;;  %282 = vmatpush.msra.mxu1 %v277_v4  ;;  %v275_v7 = vld [vmem:[%s547_s3 + $0x68] sm:$0xff]  ;;  %v231_v8 = vld [vmem:[%s545_s1 + $0x50] sm:$0xff]  ;;  %s215_s6 = scalar_lea.vmem %s544_s0, %s362_s20  ;;  %s219_s26 = scalar_lea.vmem %s549_s5, %s362_s20 }
   0xe   : > { %242 = vmatpush.msra.mxu0 %v235_v1  ;;  %v274_v9 = vld [vmem:[%s547_s3 + $0x60] sm:$0xff]  ;;  %v230_v10 = vld [vmem:[%s545_s1 + $0x48] sm:$0xff]  ;;  %v273_v11 = vld [vmem:[%s547_s3 + $0x58] sm:$0xff] }
   0xf   : > { %283 = vmatpush.msra.mxu1 %v276_v5  ;;  %v229_v12 = vld [vmem:[%s545_s1 + $0x40] sm:$0xff]  ;;  %v272_v13 = vld [vmem:[%s547_s3 + $0x50] sm:$0xff]  ;;  %v228_v14 = vld [vmem:[%s545_s1 + $0x38] sm:$0xff] }
  0x10   : > { %243 = vmatpush.msra.mxu0 %v234_v2  ;;  %v271_v15 = vld [vmem:[%s547_s3 + $0x48] sm:$0xff]  ;;  %v227_v16 = vld [vmem:[%s545_s1 + $0x30] sm:$0xff]  ;;  %v270_v17 = vld [vmem:[%s547_s3 + $0x40] sm:$0xff] }
  0x11   : > { %284 = vmatpush.msra.mxu1 %v275_v7  ;;  %v226_v18 = vld [vmem:[%s545_s1 + $0x28] sm:$0xff]  ;;  %v269_v19 = vld [vmem:[%s547_s3 + $0x38] sm:$0xff]  ;;  %v225_v20 = vld [vmem:[%s545_s1 + $0x20] sm:$0xff] }
  0x12   : > { %244 = vmatpush.msra.mxu0 %v233_v3  ;;  %v268_v21 = vld [vmem:[%s547_s3 + $0x30] sm:$0xff]  ;;  %v224_v22 = vld [vmem:[%s545_s1 + $0x18] sm:$0xff]  ;;  %v267_v23 = vld [vmem:[%s547_s3 + $0x28] sm:$0xff] }
  0x13   : > { %285 = vmatpush.msra.mxu1 %v274_v9  ;;  %v223_v24 = vld [vmem:[%s545_s1 + $0x10] sm:$0xff]  ;;  %v266_v25 = vld [vmem:[%s547_s3 + $0x20] sm:$0xff]  ;;  %v222_v26 = vld [vmem:[%s545_s1 + $0x8] sm:$0xff] }
  0x14   : > { %245 = vmatpush.msra.mxu0 %v232_v6  ;;  %v265_v27 = vld [vmem:[%s547_s3 + $0x18] sm:$0xff]  ;;  %v221_v28 = vld [vmem:[%s545_s1] sm:$0xff]  ;;  %v264_v30 = vld [vmem:[%s547_s3 + $0x10] sm:$0xff] }
  0x15   : > { %286 = vmatpush.msra.mxu1 %v273_v11  ;;  %v220_v29 = vld [vmem:[%s215_s6] sm:$0xff]  ;;  %v263_v31 = vld [vmem:[%s547_s3 + $0x8] sm:$0xff] }
  0x16   : > { %246 = vmatpush.msra.mxu0 %v231_v8  ;;  %v262_v32 = vld [vmem:[%s547_s3] sm:$0xff] }
  0x17   : > { %287 = vmatpush.msra.mxu1 %v272_v13  ;;  %v374_v33 = vld [vmem:[%s546_s2] ss:$0 sm:$0xff] }
  0x18   : > { %247 = vmatpush.msra.mxu0 %v230_v10  ;;  %v375_v37 = vld [vmem:[%s548_s4] ss:$0 sm:$0xff] }
  0x19   : > { %288 = vmatpush.msra.mxu1 %v271_v15 }
  0x1a   : > { %248 = vmatpush.msra.mxu0 %v229_v12 }
  0x1b   : > { %289 = vmatpush.msra.mxu1 %v270_v17 }
  0x1c   : > { %249 = vmatpush.msra.mxu0 %v228_v14 }
  0x1d   : > { %290 = vmatpush.msra.mxu1 %v269_v19 }
  0x1e   : > { %250 = vmatpush.msra.mxu0 %v227_v16 }
  0x1f   : > { %291 = vmatpush.msra.mxu1 %v268_v21 }
  0x20   : > { %251 = vmatpush.msra.mxu0 %v226_v18 }
  0x21   : > { %292 = vmatpush.msra.mxu1 %v267_v23 }
  0x22   : > { %252 = vmatpush.msra.mxu0 %v225_v20 }
  0x23   : > { %293 = vmatpush.msra.mxu1 %v266_v25 }
  0x24   : > { %253 = vmatpush.msra.mxu0 %v224_v22 }
  0x25   : > { %294 = vmatpush.msra.mxu1 %v265_v27 }
  0x26   : > { %254 = vmatpush.msra.mxu0 %v223_v24 }
  0x27   : > { %295 = vmatpush.msra.mxu1 %v264_v30 }
  0x28   : > { %255 = vmatpush.msra.mxu0 %v222_v26 }
  0x29   : > { %296 = vmatpush.msra.mxu1 %v263_v31 }
  0x2a   : > { %256 = vmatpush.msra.mxu0 %v221_v28 }
  0x2b   : > { %257 = vmatmul.f32.vlgmr.msra.gmra.mxu0 %v220_v29  ;;  %297 = vmatpush.msra.mxu1 %v262_v32 }
  0xa8   : > { %v258_v34 = vpop.f32.mrf.mxu0 }
  0xa9   : > { %v259_v35 = vadd.f32 %v374_v33, %v258_v34 }
  0xab   : > { %v261_v36 = vmax.f32 %v259_v35, 0.0 }
  0xad   : > { %298 = vmatmul.f32.vlgmr.msra.gmra.mxu1 %v261_v36 }
 0x12a   : > { %v299_v38 = vpop.f32.mrf.mxu1 }
 0x12b   : > { %v300_v39 = vadd.f32 %v375_v37, %v299_v38 }
 0x12d   : > { %v302_v40 = vadd.f32 %v300_v39, %v220_v29 }
 0x12f   : > { %303 = vst [vmem:[%s219_s26] sm:$0xff] %v302_v40 }
 0x130 PF: > { %s15_s18 = sadd.s32 1, %s382_s18  }
 0x131   : > { %p12_p4 = scmp.ge.s32.totalorder %s15_s18, 4  }
 0x133   :  { %14 = sbr.rel (!%p12_p4) target bundleno = 1 (0x1), region = 70 }

</bundles_post_ra>
